<compile_context>
chip_gen: v7x
topology: tpu7x:2x2x1
jax: 0.10.0
libtpu: 0.0.40
codegen_flags: <defaults>
</compile_context>

<pallas_src>
import functools

import jax
import jax.numpy as jnp
from jax import lax
from jax.experimental import pallas as pl
from jax.experimental.pallas import tpu as pltpu


def _round_up(a: int, m: int) -> int:
    return ((a + m - 1) // m) * m


def _tv_kernel(x_ref, dxm_ref, dym_ref, out_ref, *, L, w, cr, n_chunks):
    """One grid step: a (cr * n_chunks, L) block of flattened image rows.

    x_ref   : (tr, L)    input rows (one row = one (batch, channel) image, h*w flat)
    dxm_ref : (1, L) f32 {0,1} mask, zero on the last column of every image row
    dym_ref : (1, L) f32 {0,1} mask, zero on the last image row
    out_ref : (1, 1, 1) f32 partial sum of squared gradients for this block
    """
    dxm = dxm_ref[...]
    dym = dym_ref[...]

    def chunk_sum(k, acc):
        i0 = pl.multiple_of(k * cr, cr)
        xc = x_ref[pl.ds(i0, cr), :].astype(jnp.float32)        # (cr, L)
        # Neighbor to the right / below via lane rotation (XLU slot):
        #   roll(x, L - s, axis=1)[:, l] == x[:, (l + s) % L]
        # wrap-around entries are zeroed by the masks.
        right = pltpu.roll(xc, L - 1, axis=1) if L > 1 else xc   # x[:, l+1]
        below = pltpu.roll(xc, L - w, axis=1) if L > w else xc   # x[:, l+w]
        ddx = right - xc
        ddy = below - xc
        return acc + jnp.sum(ddx * ddx * dxm + ddy * ddy * dym)

    s = lax.fori_loop(0, n_chunks, chunk_sum, jnp.zeros((), jnp.float32),
                      unroll=True)
    out_ref[...] = jnp.full(out_ref.shape, s, dtype=out_ref.dtype)


def _vmem_limit_bytes() -> int:
    """~75% of the physical per-core VMEM (128 MiB v5e/v6e, 64 MiB v7x)."""
    cap = 64 * 1024 * 1024                      # conservative fallback (v7x)
    try:
        info = pltpu.get_tpu_info()
        cap = int(getattr(info, "vmem_capacity_bytes", cap))
    except Exception:                           # no TPU / interpret / API drift
        pass
    return (cap * 3) // 4


def tv_loss(x, *, tile_budget_bytes=None):
    """Pallas implementation of TVLoss()(x) (module defaults) for NCHW input."""
    b, c, h, w = x.shape
    L = h * w
    R = b * c                                   # batch & channel interchangeable here
    itemsize = x.dtype.itemsize
    row_align = 16 if itemsize == 2 else 8      # bf16 packs 16 sublanes per vreg

    vmem_limit = _vmem_limit_bytes()
    if tile_budget_bytes is None:
        # Pure streaming kernel: big input blocks; leave room for the double
        # buffer plus one compute chunk of f32 temporaries.
        tile_budget_bytes = min(16 << 20, max(2 << 20, vmem_limit // 8))

    # Compute-chunk rows: <= ~1 MiB of f32 per chunk bounds the roll/diff
    # temporaries, which is what lets the DMA block grow.
    rows_per_mib = max(1, (1 << 20) // (L * 4))
    cr = max(row_align, (rows_per_mib // row_align) * row_align)
    cr = min(cr, _round_up(R, row_align))
    # TODO(synk): tile the flattened spatial axis (row-aligned chunks with a
    # one-image-row halo for dy) so a single huge channel (e.g. 1x1x4096x4096
    # f32 on v7x) can also be blocked; with small b*c the minimum 8-row block
    # may still exceed VMEM for very large h*w.

    # Chunks per grid step: fill the DMA budget, but keep >= ~8 grid steps for
    # pipelining / megacore sharding when the problem is big enough.
    total_chunks = _round_up(R, cr) // cr
    n_chunks = max(1, min(int(tile_budget_bytes) // (cr * L * itemsize), 16))
    if total_chunks >= 8:
        n_chunks = min(n_chunks, total_chunks // 8)
    n_chunks = max(1, min(n_chunks, total_chunks))

    tr = cr * n_chunks                          # rows per grid step
    R_pad = _round_up(R, tr)
    n_steps = R_pad // tr

    xf = x.reshape(R, L)                        # lane-dense flattened spatial axis
    if R_pad != R:                              # zero rows contribute exactly 0
        xf = jnp.pad(xf, ((0, R_pad - R), (0, 0)))

    # {0,1} masks over the flattened spatial index, built once in the wrapper
    # (no integer modulo on the kernel's VPU hot path).
    col = jnp.arange(L, dtype=jnp.int32)
    dx_mask = ((col % w) != (w - 1)).astype(jnp.float32).reshape(1, L)
    dy_mask = (col < (h - 1) * w).astype(jnp.float32).reshape(1, L)

    scale = 1.0 / (b * c * h * w)
    flops = 8 * R_pad * L                       # 2 sub + 4 mul + ~2 add per element
    bytes_accessed = R_pad * L * itemsize + 2 * L * 4 + n_steps * 4

    partials = pl.pallas_call(
        functools.partial(_tv_kernel, L=L, w=w, cr=cr, n_chunks=n_chunks),
        out_shape=jax.ShapeDtypeStruct((n_steps, 1, 1), jnp.float32),
        grid_spec=pltpu.PrefetchScalarGridSpec(
            num_scalar_prefetch=0,
            grid=(n_steps,),
            in_specs=[
                pl.BlockSpec((tr, L), lambda i: (i, 0)),
                pl.BlockSpec((1, L), lambda i: (0, 0)),   # constant block index:
                pl.BlockSpec((1, L), lambda i: (0, 0)),   # masks fetched once
            ],
            out_specs=pl.BlockSpec((1, 1, 1), lambda i: (i, 0, 0)),
        ),
        compiler_params=pltpu.CompilerParams(
            dimension_semantics=("parallel",),
            vmem_limit_bytes=vmem_limit,
        ),
        cost_estimate=pl.CostEstimate(
            flops=flops, transcendentals=0, bytes_accessed=bytes_accessed),
    )(xf, dx_mask, dy_mask)

    # mean over (c,h,w), sum over b, out_norm 'b' -> overall 1/(b*c*h*w).
    return jnp.sum(partials) * scale


def tv_loss_ref(x):
    """Pure-JAX reference mirroring the PyTorch module (default config)."""
    xf = x.astype(jnp.float32)
    dx = xf[:, :, :, 1:] - xf[:, :, :, :-1]
    dy = xf[:, :, 1:, :] - xf[:, :, :-1, :]
    b, c, h, w = x.shape
    per_b = (jnp.sum(dx * dx, axis=(1, 2, 3)) +
             jnp.sum(dy * dy, axis=(1, 2, 3))) / (c * h * w)
    return jnp.sum(per_b) / b


if __name__ == "__main__":
    key = jax.random.PRNGKey(0)
    x = jax.random.normal(key, (2, 4, 16, 16), dtype=jnp.float32)

    out = jax.block_until_ready(tv_loss(x))
    ref = tv_loss_ref(x)
    assert jnp.allclose(out, ref, rtol=1e-5, atol=1e-6), (out, ref)
    print("KERNEL_OK")
</pallas_src>

<mosaic_0001>
module attributes {stable_mosaic.version = 11 : i64} {
  func.func @_tv_kernel(%arg0: i32, %arg1: memref<8x256xf32, #tpu.memory_space<vmem>>, %arg2: memref<1x256xf32, #tpu.memory_space<vmem>>, %arg3: memref<1x256xf32, #tpu.memory_space<vmem>>, %arg4: memref<1x1x1xf32, #tpu.memory_space<vmem>>) attributes {dimension_semantics = [#tpu.dimension_semantics<parallel>], iteration_bounds = array<i64: 1>, scalar_prefetch = 0 : i64, scratch_operands = 0 : i64, tpu.core_type = #tpu.core_type<tc>, window_params = [{transform_indices = @transform_0, window_bounds = array<i64: 8, 256>}, {pipeline_mode = #tpu.pipeline_mode<synchronous>, transform_indices = @transform_1, window_bounds = array<i64: 1, 256>}, {pipeline_mode = #tpu.pipeline_mode<synchronous>, transform_indices = @transform_2, window_bounds = array<i64: 1, 256>}, {transform_indices = @transform_3, window_bounds = array<i64: 1, 1, 1>}]} {
    %c0 = arith.constant 0 : index
    %c0_0 = arith.constant 0 : index
    %0 = vector.load %arg2[%c0, %c0_0] : memref<1x256xf32, #tpu.memory_space<vmem>>, vector<1x256xf32>
    %c0_1 = arith.constant 0 : index
    %c0_2 = arith.constant 0 : index
    %1 = vector.load %arg3[%c0_1, %c0_2] : memref<1x256xf32, #tpu.memory_space<vmem>>, vector<1x256xf32>
    %cst = arith.constant 0.000000e+00 : f32
    %c0_i32 = arith.constant 0 : i32
    %c8_i32 = arith.constant 8 : i32
    %2 = arith.muli %c0_i32, %c8_i32 : i32
    %3 = tpu.assume_multiple %2, 8 : i32
    %4 = arith.index_cast %3 : i32 to index
    %c0_3 = arith.constant 0 : index
    %5 = vector.load %arg1[%4, %c0_3] : memref<8x256xf32, #tpu.memory_space<vmem>>, vector<8x256xf32>
    %c255_i32 = arith.constant 255 : i32
    %6 = tpu.dynamic_rotate %5 by %c255_i32 dim 1 : vector<8x256xf32>, i32 -> vector<8x256xf32>
    %c240_i32 = arith.constant 240 : i32
    %7 = tpu.dynamic_rotate %5 by %c240_i32 dim 1 : vector<8x256xf32>, i32 -> vector<8x256xf32>
    %8 = arith.subf %6, %5 : vector<8x256xf32>
    %9 = arith.subf %7, %5 : vector<8x256xf32>
    %10 = arith.mulf %8, %8 : vector<8x256xf32>
    %11 = vector.broadcast %0 : vector<1x256xf32> to vector<8x256xf32>
    %12 = arith.mulf %10, %11 : vector<8x256xf32>
    %13 = arith.mulf %9, %9 : vector<8x256xf32>
    %14 = vector.broadcast %1 : vector<1x256xf32> to vector<8x256xf32>
    %15 = arith.mulf %13, %14 : vector<8x256xf32>
    %16 = arith.addf %12, %15 : vector<8x256xf32>
    %17 = vector.shape_cast %16 : vector<8x256xf32> to vector<1x8x256xf32>
    %cst_4 = arith.constant dense<0.000000e+00> : vector<1xf32>
    %18 = vector.multi_reduction <add>, %17, %cst_4 [1, 2] : vector<1x8x256xf32> to vector<1xf32>
    %19 = vector.shape_cast %18 : vector<1xf32> to vector<1x1x1xf32>
    %20 = vector.extract %19[0, 0, 0] : f32 from vector<1x1x1xf32>
    %21 = arith.addf %cst, %20 : f32
    %c1_i32 = arith.constant 1 : i32
    %22 = vector.broadcast %21 : f32 to vector<1x1x1xf32>
    %c0_5 = arith.constant 0 : index
    %c0_6 = arith.constant 0 : index
    %c0_7 = arith.constant 0 : index
    %23 = vector.load %arg4[%c0_5, %c0_6, %c0_7] : memref<1x1x1xf32, #tpu.memory_space<vmem>>, vector<1x1x1xf32>
    tpu.vector_store %arg4[%c0_5, %c0_6, %c0_7], %22 {strides = array<i32>} : memref<1x1x1xf32, #tpu.memory_space<vmem>>, vector<1x1x1xf32>,
    return
  }
  func.func @transform_0(%arg0: i32) -> (i32, i32) {
    %c0_i32 = arith.constant 0 : i32
    %c0_i32_0 = arith.constant 0 : i32
    return %arg0, %c0_i32 : i32, i32
  }
  func.func @transform_1(%arg0: i32) -> (i32, i32) {
    %c0_i32 = arith.constant 0 : i32
    %c0_i32_0 = arith.constant 0 : i32
    %c0_i32_1 = arith.constant 0 : i32
    return %c0_i32, %c0_i32_0 : i32, i32
  }
  func.func @transform_2(%arg0: i32) -> (i32, i32) {
    %c0_i32 = arith.constant 0 : i32
    %c0_i32_0 = arith.constant 0 : i32
    %c0_i32_1 = arith.constant 0 : i32
    return %c0_i32, %c0_i32_0 : i32, i32
  }
  func.func @transform_3(%arg0: i32) -> (i32, i32, i32) {
    %c0_i32 = arith.constant 0 : i32
    %c0_i32_0 = arith.constant 0 : i32
    %c0_i32_1 = arith.constant 0 : i32
    return %arg0, %c0_i32, %c0_i32_0 : i32, i32, i32
  }
}

</mosaic_0001>

<bundles_post_ra>
// kernel: tpu_custom_call.1
= control target key start
LH: loop header
LB: loop body
LE: loop exit
PB: predicated region body
PF: predicated region fallthrough
CT: control target
= control target key end

     0   :  { %8 = vsyncpa [#allocation3], 0  ;;  %s223_s0 = inlined_call_operand.hbm [shape: f32[8,256], index: 0, kind: input, shape index: {}]   ;;  %s224_s1 = inlined_call_operand.vmem [shape: f32[1,256], index: 1, kind: input, shape index: {}]   ;;  %s225_s2 = inlined_call_operand.vmem [shape: f32[1,256], index: 2, kind: input, shape index: {}]   ;;  %s226_s3 = inlined_call_operand.hbm [shape: f32[1,1,1], index: 3, kind: output, shape index: {}]  }
   0x1   :  { %9 = vsyncpa [#allocation4], 0  ;;  %s169_s12 = smov [#allocation2]   ;;  %s121_s16 = scalar_lea.hbm %s223_s0, 256 }
   0x2   :  { %s16_s13 = sshll.u32 %s169_s12, 4  ;;  %p122_p0 = scmp.ne.s32.totalorder %s223_s0, %s121_s16  ;;  %s17_s13 = int_to_ptr.vmem [resolvable:$true] %s16_s13 }
   0x3   :  { %p125_p1 = scmp.lt.u32.totalorder %s121_s16, %s223_s0 }
   0x5   :  { %p127_p2 = pnand %p125_p1, %p122_p0 }
   0x7   :  { %130 = shalt.err (!%p127_p2)
}
   0x8   :  { %s131_s21 = scalar_lea.vmem %s17_s13, 256  ;;  %p136_p4 = scmp.lt.s32.totalorder %s17_s13, %s17_s13 }
   0x9   :  { %p132_p3 = scmp.ne.s32.totalorder %s17_s13, %s131_s21  ;;  %p137_p5 = scmp.lt.s32.totalorder %s131_s21, %s131_s21 }
   0xb   :  { %p138_p6 = por %p137_p5, %p136_p4 }
   0xd   :  { %p139_p7 = pnand %p138_p6, %p132_p3 }
   0xf   :  { %142 = shalt.err (!%p139_p7)
}
  0x10   :  { %19 = dma.hbm_to_vmem [thread:$0]  %s223_s0, 256, %s17_s13, [#allocation3]  }
  0x11   :  { %165 = dma.done.wait [#allocation3], 256  }
  0x12   :  { %166 = vsyncadd [#allocation3], 4294967040  ;;  %v32_v0 = vld [vmem:[#allocation2] sm:$0xff]  ;;  %s170_s24 = smov 112   ;;  %s171_s25 = smov 127   ;;  %v33_v1 = vld [vmem:[#allocation2 + $0x8] sm:$0xff]  ;;  %v38_v2 = vlaneseq }
  0x13   :  { %43 = vrot.lane.b32.xlu1 %v32_v0, %s170_s24  ;;  %34 = vrot.lane.b32.xlu0 %v32_v0, %s171_s25  ;;  %v28_v9 = vld [vmem:[%s225_s2] sm:$0x3]  ;;  %vm98_vm2 = vcmask 0  }
  0x14   :  { %v58_v3 = vshrl.u32 %v38_v2, 7  ;;  %v39_v4 = vand.u32 127, %v38_v2  ;;  %v27_v10 = vld [vmem:[%s224_s1] sm:$0x3]  ;;  %s172_s1 = smov [#allocation5]  }
  0x15   :  { %s106_s2 = sshll.u32 %s172_s1, 4  ;;  %s107_s2 = int_to_ptr.vmem [resolvable:$true] %s106_s2 }
  0x16   :  { %v59_v7 = vsub.s32 0, %v58_v3  ;;  %v63_v8 = vsub.s32 1, %v58_v3  ;;  %vm47_vm0 = vcmp.lt.s32.totalorder %v39_v4, 112  ;;  %vm40_vm1 = vcmp.lt.s32.totalorder %v39_v4, 127  ;;  %s143_s30 = scalar_lea.vmem %s107_s2, 16  ;;  %s147_s4 = scalar_lea.vmem %s107_s2, 32 }
  0x17   :  { %45 = vrot.lane.b32.xlu1 %v33_v1, %s170_s24  ;;  %36 = vrot.lane.b32.xlu0 %v33_v1, %s171_s25  ;;  %p144_p8 = scmp.ne.s32.totalorder %s107_s2, %s143_s30  ;;  %p148_p9 = scmp.lt.s32.totalorder %s107_s2, %s107_s2 }
  0x18   :  { %v75_v12 = vrot.slane %v28_v9, %v59_v7  ;;  %v79_v13 = vrot.slane %v28_v9, %v63_v8  ;;  %v60_v15 = vrot.slane %v27_v10, %v59_v7  ;;  %v64_v16 = vrot.slane %v27_v10, %v63_v8  ;;  %p149_p10 = scmp.lt.s32.totalorder %s147_s4, %s143_s30 }
  0x1a   :  { %p150_p11 = por %p149_p10, %p148_p9 }
  0x1c   :  { %p151_p12 = pnand %p150_p11, %p144_p8 }
  0x85   :  { %v44_v5 = vpop.permute.xlu1 %43  ;;  %v35_v6 = vpop.permute.xlu0 %34 }
  0x89   :  { %v46_v11 = vpop.permute.xlu1 %45  ;;  %v37_v14 = vpop.permute.xlu0 %36 }
  0x8a   :  { %v48_v17 = vsel %vm47_vm0, %v44_v5, %v46_v11  ;;  %v49_v18 = vsel %vm47_vm0, %v46_v11, %v44_v5  ;;  %v41_v19 = vsel %vm40_vm1, %v35_v6, %v37_v14  ;;  %v42_v20 = vsel %vm40_vm1, %v37_v14, %v35_v6 }
  0x8b   :  { %v52_v21 = vsub.f32 %v48_v17, %v32_v0  ;;  %v53_v22 = vsub.f32 %v49_v18, %v33_v1  ;;  %v50_v23 = vsub.f32 %v41_v19, %v32_v0  ;;  %v51_v24 = vsub.f32 %v42_v20, %v33_v1 }
  0x8d   :  { %v69_v25 = vmul.f32 %v52_v21, %v52_v21  ;;  %v70_v26 = vmul.f32 %v53_v22, %v53_v22  ;;  %v54_v27 = vmul.f32 %v50_v23, %v50_v23  ;;  %v55_v28 = vmul.f32 %v51_v24, %v51_v24 }
  0x8f   :  { %v82_v29 = vmul.f32 %v75_v12, %v69_v25  ;;  %v83_v30 = vmul.f32 %v79_v13, %v70_v26  ;;  %v67_v31 = vmul.f32 %v60_v15, %v54_v27  ;;  %v68_v32 = vmul.f32 %v64_v16, %v55_v28 }
  0x91   :  { %v84_v33 = vadd.f32 %v82_v29, %v67_v31  ;;  %v85_v34 = vadd.f32 %v83_v30, %v68_v32 }
  0x93   :  { %v86_v35 = vadd.f32 %v85_v34, %v84_v33 }
  0x95   :  { %87 = vadd.xlane.f32.xlu0 %v86_v35 }
 0x122   :  { %v88_v36 = vpop.xlane.xlu0 %87 }
 0x123   :  { %v89_v37 = vrot.slane %v88_v36, 4 }
 0x125   :  { %v90_v38 = vadd.f32 %v89_v37, %v88_v36 }
 0x127   :  { %v91_v39 = vrot.slane %v90_v38, 2 }
 0x129   :  { %v92_v40 = vadd.f32 %v91_v39, %v90_v38 }
 0x12b   :  { %v93_v41 = vrot.slane %v92_v40, 1 }
 0x12d   :  { %v94_v42 = vadd.f32 %v93_v41, %v92_v40 }
 0x12f   :  { %115 = vpush %v94_v42 }
 0x160   :  { %s116_s29 = spop %115 }
 0x161   :  { %v97_v43 = vstv %s116_s29 }
 0x162   :  { %99 = vst.msk [vmem:[#allocation5] sm:$0x1] %vm98_vm2, %v97_v43 }
 0x163   :  { %154 = shalt.err (!%p151_p12)
}
 0x164   :  { %s155_s7 = scalar_lea.hbm %s226_s3, 16 }
 0x165   :  { %p156_p13 = scmp.ne.s32.totalorder %s226_s3, %s155_s7  ;;  %p159_p0 = scmp.lt.u32.totalorder %s155_s7, %s226_s3 }
 0x167   :  { %p161_p1 = pnand %p159_p0, %p156_p13 }
 0x169   :  { %164 = shalt.err (!%p161_p1)
}
 0x16a   :  { %109 = dma.vmem_to_hbm [thread:$0]  %s107_s2, 16, %s226_s3, [#allocation4]  }
 0x16b   :  { %167 = dma.done.wait [#allocation4], 16  }
 0x16c   :  { %168 = vsyncadd [#allocation4], 4294967280 }
 0x16d   :  { %113 = vsyncpa [#allocation3], 1 }
 0x16e   :  { %114 = vsyncpa [#allocation4], 1 }

</bundles_post_ra>
